<compile_context>
chip_gen: v7x
topology: tpu7x:2x2x1
jax: 0.10.0
libtpu: 0.0.40
codegen_flags: <defaults>
</compile_context>

<pallas_src>
import jax
import jax.numpy as jnp
from jax import lax
from jax.experimental import pallas as pl
from jax.experimental.pallas import tpu as pltpu

_LANES = 128
_SUBLANES = 8
_CHUNK_ROWS = 512  # rows of (., 128) per inner step: 256 KiB f32 of temporaries


def _make_kernel(block_rows, valid_rows):
    """Build the per-block reduction kernel. All sizes are static Python ints."""
    ragged = (valid_rows % block_rows) != 0      # last grid block extends OOB?
    n_full_chunks = block_rows // _CHUNK_ROWS
    rem_rows = block_rows % _CHUNK_ROWS          # multiple of 8 by construction

    def chunk_partial(e_ref, l_ref, start, nrows, block_base):
        e = e_ref[pl.ds(start, nrows), :].astype(jnp.float32)
        l = l_ref[pl.ds(start, nrows), :].astype(jnp.float32)
        d = e - l
        if ragged:
            # OOB rows of the last block hold unspecified data (could be
            # Inf/NaN); zero them with a SELECT before squaring.
            row = lax.broadcasted_iota(jnp.int32, (nrows, _LANES), 0)
            d = jnp.where(block_base + start + row < valid_rows, d, 0.0)
        sq = d * d
        # Fold the chunk into an (8, 128) vreg-shaped partial: pure VPU adds
        # (leading-axis reduction, no XLU / cross-lane work).
        return jnp.sum(sq.reshape(nrows // _SUBLANES, _SUBLANES, _LANES), axis=0)

    def kernel(e_ref, l_ref, out_ref):
        block_base = pl.program_id(0) * block_rows
        acc = jnp.zeros((_SUBLANES, _LANES), jnp.float32)
        if n_full_chunks > 0:
            def body(i, a):
                start = pl.multiple_of(i * _CHUNK_ROWS, _CHUNK_ROWS)
                return a + chunk_partial(e_ref, l_ref, start, _CHUNK_ROWS,
                                         block_base)
            acc = lax.fori_loop(0, n_full_chunks, body, acc, unroll=True)
        if rem_rows:
            acc = acc + chunk_partial(e_ref, l_ref, n_full_chunks * _CHUNK_ROWS,
                                      rem_rows, block_base)
        out_ref[...] = acc

    return kernel


def complex_mse_loss(csi_est, csi_label, *, max_block_rows=8192):
    """csi_est, csi_label: (..., 2) float32/bf16. Returns scalar f32 loss."""
    assert csi_est.shape == csi_label.shape
    assert csi_est.shape[-1] == 2
    n_complex = 1
    for d in csi_est.shape[:-1]:
        n_complex *= d
    n = n_complex * 2  # total interleaved real/imag element count

    # Free, contiguous flatten (no strided real/imag slicing).
    e = csi_est.reshape(-1)
    l = csi_label.reshape(-1)

    # Rare fallback only: if n is not a multiple of 128 the free (rows, 128)
    # view is impossible, so pad the <128-element sub-row tail with zeros on
    # BOTH inputs (diff == 0 there -> sum unchanged).  Never triggers for
    # typical CSI shapes (B*M multiple of 64) and there is NO block-granular
    # padding anymore -- the ragged last block is masked inside the kernel.
    if n % _LANES != 0:
        pad = _LANES - n % _LANES
        e = jnp.pad(e, (0, pad))
        l = jnp.pad(l, (0, pad))
    rows = -(-n // _LANES)

    e2 = e.reshape(rows, _LANES)
    l2 = l.reshape(rows, _LANES)

    itemsize = jnp.dtype(csi_est.dtype).itemsize
    sub_mult = {4: 8, 2: 16, 1: 32}.get(itemsize, 8)   # min sublane tile
    block_rows = min(max_block_rows, -(-rows // sub_mult) * sub_mult)
    block_rows = max(block_rows, sub_mult)
    num_blocks = -(-rows // block_rows)                # cdiv: no wrapper padding

    kernel = _make_kernel(block_rows, rows)

    in_spec = pl.BlockSpec((block_rows, _LANES), lambda j: (j, 0))
    out_spec = pl.BlockSpec((_SUBLANES, _LANES), lambda j: (j, 0))

    partials_bytes = num_blocks * _SUBLANES * _LANES * 4
    cost = pl.CostEstimate(
        flops=3 * n,                 # sub + mul + add per element
        transcendentals=0,
        bytes_accessed=2 * rows * _LANES * itemsize + partials_bytes,
    )

    partials = pl.pallas_call(
        kernel,
        out_shape=jax.ShapeDtypeStruct((num_blocks * _SUBLANES, _LANES),
                                       jnp.float32),
        grid_spec=pltpu.PrefetchScalarGridSpec(
            num_scalar_prefetch=0,
            grid=(num_blocks,),
            in_specs=[in_spec, in_spec],
            out_specs=out_spec,
        ),
        compiler_params=pltpu.CompilerParams(
            dimension_semantics=("parallel",),        # v7x: split blocks over 2 TCs
            vmem_limit_bytes=32 * 1024 * 1024,        # 16 MiB buffers + headroom
        ),
        cost_estimate=cost,
    )(e2, l2)

    # Tiny final reduction + mean over the B*M complex entries (matches torch).
    return jnp.sum(partials) / jnp.float32(n_complex)


if __name__ == "__main__":
    key = jax.random.PRNGKey(0)
    k1, k2 = jax.random.split(key)

    B, M = 2, 256  # csi_matrix = 256 (e.g. flattened 16x16 grid)
    csi_est = jax.random.normal(k1, (B, M, 2), dtype=jnp.float32)
    csi_label = jax.random.normal(k2, (B, M, 2), dtype=jnp.float32)

    loss = complex_mse_loss(csi_est, csi_label)
    loss = jax.block_until_ready(loss)

    # Reference in plain JAX (same formula as the PyTorch module).
    diff = csi_est - csi_label
    ref = jnp.mean(jnp.square(jnp.sqrt(jnp.square(diff[..., 0]) +
                                       jnp.square(diff[..., 1]))))

    assert jnp.allclose(loss, ref, rtol=1e-5, atol=1e-6), (loss, ref)
    print("KERNEL_OK")
</pallas_src>

<mosaic_0001>
module attributes {stable_mosaic.version = 11 : i64} {
  func.func @kernel(%arg0: i32, %arg1: memref<8x128xf32, #tpu.memory_space<vmem>>, %arg2: memref<8x128xf32, #tpu.memory_space<vmem>>, %arg3: memref<8x128xf32, #tpu.memory_space<vmem>>) attributes {dimension_semantics = [#tpu.dimension_semantics<parallel>], iteration_bounds = array<i64: 1>, scalar_prefetch = 0 : i64, scratch_operands = 0 : i64, tpu.core_type = #tpu.core_type<tc>, window_params = [{transform_indices = @transform_0, window_bounds = array<i64: 8, 128>}, {transform_indices = @transform_1, window_bounds = array<i64: 8, 128>}, {transform_indices = @transform_2, window_bounds = array<i64: 8, 128>}]} {
    %cst = arith.constant 0.000000e+00 : f32
    %0 = vector.broadcast %cst : f32 to vector<8x128xf32>
    %c0 = arith.constant 0 : index
    %c0_0 = arith.constant 0 : index
    %1 = vector.load %arg1[%c0, %c0_0] : memref<8x128xf32, #tpu.memory_space<vmem>>, vector<8x128xf32>
    %c0_1 = arith.constant 0 : index
    %c0_2 = arith.constant 0 : index
    %2 = vector.load %arg2[%c0_1, %c0_2] : memref<8x128xf32, #tpu.memory_space<vmem>>, vector<8x128xf32>
    %3 = arith.subf %1, %2 : vector<8x128xf32>
    %4 = arith.mulf %3, %3 : vector<8x128xf32>
    %5 = vector.shape_cast %4 : vector<8x128xf32> to vector<1x8x128xf32>
    %cst_3 = arith.constant dense<0.000000e+00> : vector<8x128xf32>
    %6 = vector.multi_reduction <add>, %5, %cst_3 [0] : vector<1x8x128xf32> to vector<8x128xf32>
    %7 = arith.addf %0, %6 : vector<8x128xf32>
    %c0_4 = arith.constant 0 : index
    %c0_5 = arith.constant 0 : index
    %8 = vector.load %arg3[%c0_4, %c0_5] : memref<8x128xf32, #tpu.memory_space<vmem>>, vector<8x128xf32>
    tpu.vector_store %arg3[%c0_4, %c0_5], %7 {strides = array<i32>} : memref<8x128xf32, #tpu.memory_space<vmem>>, vector<8x128xf32>,
    return
  }
  func.func @transform_0(%arg0: i32) -> (i32, i32) {
    %c0_i32 = arith.constant 0 : i32
    %c0_i32_0 = arith.constant 0 : i32
    return %arg0, %c0_i32 : i32, i32
  }
  func.func @transform_1(%arg0: i32) -> (i32, i32) {
    %c0_i32 = arith.constant 0 : i32
    %c0_i32_0 = arith.constant 0 : i32
    return %arg0, %c0_i32 : i32, i32
  }
  func.func @transform_2(%arg0: i32) -> (i32, i32) {
    %c0_i32 = arith.constant 0 : i32
    %c0_i32_0 = arith.constant 0 : i32
    return %arg0, %c0_i32 : i32, i32
  }
}

</mosaic_0001>

<bundles_post_ra>
// kernel: tpu_custom_call.1
= control target key start
LH: loop header
LB: loop body
LE: loop exit
PB: predicated region body
PF: predicated region fallthrough
CT: control target
= control target key end

     0   :  { %7 = vsyncpa [#allocation3], 0  ;;  %s188_s0 = inlined_call_operand.hbm [shape: f32[8,128], index: 0, kind: input, shape index: {}]   ;;  %s189_s1 = inlined_call_operand.hbm [shape: f32[8,128], index: 1, kind: input, shape index: {}]   ;;  %s190_s2 = inlined_call_operand.hbm [shape: f32[8,128], index: 2, kind: output, shape index: {}]  }
   0x1   :  { %8 = vsyncpa [#allocation6], 0 }
   0x2   :  { %9 = vsyncpa [#allocation4], 0  ;;  %s134_s9 = smov [#allocation2]   ;;  %s135_s11 = smov [#allocation5]  }
   0x3   :  { %s16_s10 = sshll.u32 %s134_s9, 4  ;;  %s26_s12 = sshll.u32 %s135_s11, 4  ;;  %s17_s10 = int_to_ptr.vmem [resolvable:$true] %s16_s10  ;;  %s27_s12 = int_to_ptr.vmem [resolvable:$true] %s26_s12 }
   0x4   :  { %s62_s15 = scalar_lea.hbm %s188_s0, 128 }
   0x5   :  { %p63_p0 = scmp.ne.s32.totalorder %s188_s0, %s62_s15  ;;  %p66_p1 = scmp.lt.u32.totalorder %s62_s15, %s188_s0 }
   0x7   :  { %p68_p2 = pnand %p66_p1, %p63_p0 }
   0x9   :  { %71 = shalt.err (!%p68_p2)
}
   0xa   :  { %s72_s20 = scalar_lea.vmem %s17_s10, 128  ;;  %p77_p4 = scmp.lt.s32.totalorder %s17_s10, %s17_s10 }
   0xb   :  { %p73_p3 = scmp.ne.s32.totalorder %s17_s10, %s72_s20  ;;  %p78_p5 = scmp.lt.s32.totalorder %s72_s20, %s72_s20 }
   0xd   :  { %p79_p6 = por %p78_p5, %p77_p4 }
   0xf   :  { %p80_p7 = pnand %p79_p6, %p73_p3 }
  0x11   :  { %83 = shalt.err (!%p80_p7)
}
  0x12   :  { %19 = dma.hbm_to_vmem [thread:$0]  %s188_s0, 128, %s17_s10, [#allocation3]  }
  0x13   :  { %s84_s25 = scalar_lea.hbm %s189_s1, 128 }
  0x14   :  { %p85_p8 = scmp.ne.s32.totalorder %s189_s1, %s84_s25  ;;  %p88_p9 = scmp.lt.u32.totalorder %s84_s25, %s189_s1 }
  0x16   :  { %p90_p10 = pnand %p88_p9, %p85_p8 }
  0x18   :  { %93 = shalt.err (!%p90_p10)
}
  0x19   :  { %s94_s30 = scalar_lea.vmem %s27_s12, 128  ;;  %p99_p12 = scmp.lt.s32.totalorder %s27_s12, %s27_s12 }
  0x1a   :  { %p95_p11 = scmp.ne.s32.totalorder %s27_s12, %s94_s30  ;;  %p100_p13 = scmp.lt.s32.totalorder %s94_s30, %s94_s30 }
  0x1c   :  { %p101_p0 = por %p100_p13, %p99_p12 }
  0x1e   :  { %p102_p1 = pnand %p101_p0, %p95_p11 }
  0x20   :  { %105 = shalt.err (!%p102_p1)
}
  0x21   :  { %29 = dma.hbm_to_vmem [thread:$0]  %s189_s1, 128, %s27_s12, [#allocation6]  }
  0x22   :  { %128 = dma.done.wait [#allocation3], 128  }
  0x23   :  { %129 = vsyncadd [#allocation3], 4294967168 }
  0x24   :  { %130 = dma.done.wait [#allocation6], 128  }
  0x25   :  { %131 = vsyncadd [#allocation6], 4294967168  ;;  %v36_v0 = vld [vmem:[#allocation2] sm:$0xff]  ;;  %v37_v1 = vld [vmem:[#allocation5] sm:$0xff]  ;;  %s136_s4 = smov [#allocation7]  }
  0x26   :  { %s49_s5 = sshll.u32 %s136_s4, 4  ;;  %v38_v2 = vsub.f32 %v36_v0, %v37_v1  ;;  %s50_s5 = int_to_ptr.vmem [resolvable:$true] %s49_s5 }
  0x27   :  { %s106_s6 = scalar_lea.vmem %s50_s5, 128  ;;  %p111_p3 = scmp.lt.s32.totalorder %s50_s5, %s50_s5 }
  0x28   :  { %v39_v3 = vmul.f32 %v38_v2, %v38_v2  ;;  %p107_p2 = scmp.ne.s32.totalorder %s50_s5, %s106_s6  ;;  %p112_p4 = scmp.lt.s32.totalorder %s106_s6, %s106_s6 }
  0x2a   :  { %42 = vst [vmem:[#allocation7] sm:$0xff] %v39_v3  ;;  %p113_p5 = por %p112_p4, %p111_p3 }
  0x2c   :  { %p114_p6 = pnand %p113_p5, %p107_p2 }
  0x2e   :  { %117 = shalt.err (!%p114_p6)
}
  0x2f   :  { %s118_s8 = scalar_lea.hbm %s190_s2, 128 }
  0x30   :  { %p119_p7 = scmp.ne.s32.totalorder %s190_s2, %s118_s8  ;;  %p122_p8 = scmp.lt.u32.totalorder %s118_s8, %s190_s2 }
  0x32   :  { %p124_p9 = pnand %p122_p8, %p119_p7 }
  0x34   :  { %127 = shalt.err (!%p124_p9)
}
  0x35   :  { %52 = dma.vmem_to_hbm [thread:$0]  %s50_s5, 128, %s190_s2, [#allocation4]  }
  0x36   :  { %132 = dma.done.wait [#allocation4], 128  }
  0x37   :  { %133 = vsyncadd [#allocation4], 4294967168 }
  0x38   :  { %56 = vsyncpa [#allocation3], 1 }
  0x39   :  { %57 = vsyncpa [#allocation6], 1 }
  0x3a   :  { %58 = vsyncpa [#allocation4], 1 }

</bundles_post_ra>
